<compile_context>
chip_gen: v7x
topology: tpu7x:2x2x1
jax: 0.10.0
libtpu: 0.0.40
codegen_flags: <defaults>
</compile_context>

<pallas_src>
import functools

import jax
import jax.numpy as jnp
from jax.experimental import pallas as pl
from jax.experimental.pallas import tpu as pltpu

_LANES = 128


def _round_up(x: int, m: int) -> int:
    return ((x + m - 1) // m) * m


def _num_tensorcores() -> int:
    """Best-effort: 2 on dual-TensorCore chips (v7x), else 1."""
    try:
        kind = jax.devices()[0].device_kind.lower()
    except Exception:
        return 1
    return 2 if ("7x" in kind or "v7" in kind) else 1


def _pairwise_loss_kernel(chosen_ref, reject_ref, out_ref, acc_ref, *,
                          batch, tile_r, tiles_per_split, lanes, inv_batch):
    """One (tile_r, lanes) tile: stable -log(sigmoid(chosen - reject)) partial sum."""
    c = pl.program_id(0)                  # TensorCore split (outer, "parallel")
    t = pl.program_id(1)                  # reduction tile within split (inner)
    gt = c * tiles_per_split + t          # global tile index

    @pl.when(t == 0)
    def _init():
        acc_ref[...] = jnp.zeros_like(acc_ref)

    diff = chosen_ref[...].astype(jnp.float32) - reject_ref[...].astype(jnp.float32)
    # -log(sigmoid(diff)) == softplus(-diff), numerically-safe form.
    elem = jnp.maximum(-diff, 0.0) + jnp.log1p(jnp.exp(-jnp.abs(diff)))

    # Only tiles whose flat range reaches past `batch` can contain padded or
    # partial-block garbage; every other tile takes the mask-free fast path.
    is_tail = (gt + 1) * (tile_r * lanes) > batch

    @pl.when(jnp.logical_not(is_tail))
    def _steady():
        # Sublane-only reduce into the lane-wide accumulator.
        acc_ref[...] += jnp.sum(elem, axis=0, keepdims=True)

    @pl.when(is_tail)
    def _tail():
        row = jax.lax.broadcasted_iota(jnp.int32, elem.shape, 0)
        lane = jax.lax.broadcasted_iota(jnp.int32, elem.shape, 1)
        flat = (gt * tile_r + row) * lanes + lane
        masked = jnp.where(flat < batch, elem, 0.0)
        acc_ref[...] += jnp.sum(masked, axis=0, keepdims=True)

    @pl.when(t == tiles_per_split - 1)
    def _finalize():
        # Single cross-lane reduce per split; mean = sum * (1/batch) with the
        # reciprocal folded in as a compile-time constant.
        out_ref[...] = jnp.sum(acc_ref[...], keepdims=True) * inv_batch


def pairwise_loss(chosen_reward: jax.Array, reject_reward: jax.Array, *,
                  tile_rows: int = 2048,
                  min_pallas_batch: int = 1 << 16) -> jax.Array:
    """-mean(log(sigmoid(chosen - reject))) via a Pallas TPU streaming reduction.

    Args:
      chosen_reward: (batch,) float array (f32 or bf16).
      reject_reward: (batch,) float array (same shape/dtype).
      tile_rows: rows (of 128 lanes) per reduction tile; rounded to 8.
      min_pallas_batch: below this, use a plain fused jnp expression instead
        of launching the kernel (launch/DMA overhead dominates tiny batches).
    Returns:
      scalar float32 loss.
    """
    assert chosen_reward.shape == reject_reward.shape
    batch = int(chosen_reward.shape[0])
    lanes = _LANES

    if batch < min_pallas_batch:
        # TODO(synk): tiny batches are best left to XLA to fuse into the graph.
        d = chosen_reward.astype(jnp.float32) - reject_reward.astype(jnp.float32)
        return jnp.mean(jnp.maximum(-d, 0.0) + jnp.log1p(jnp.exp(-jnp.abs(d))))

    # Lane/sublane-dense slab geometry.  No pad when batch is lane-aligned;
    # otherwise pad only to the next (8*128)-element boundary (tiny, and
    # allow_input_fusion lets it fuse into the kernel's input DMA).
    if batch % lanes == 0:
        padded = batch
    else:
        padded = _round_up(batch, 8 * lanes)
    rows = padded // lanes

    def to_slab(x):
        x = x.reshape(-1)
        if padded != batch:
            x = jnp.pad(x, (0, padded - batch))   # pad values masked in-kernel
        return x.reshape(rows, lanes)

    c_slab = to_slab(chosen_reward)
    r_slab = to_slab(reject_reward)

    tile_r = _round_up(min(int(tile_rows), _round_up(rows, 8)), 8)
    total_tiles = -(-rows // tile_r)

    # 2-way split only on dual-TC chips and only if each core keeps >= 2
    # reduction steps to double-buffer against.
    num_splits = 2 if (_num_tensorcores() >= 2 and total_tiles >= 4) else 1
    tiles_per_split = _round_up(total_tiles, num_splits) // num_splits

    kernel = functools.partial(
        _pairwise_loss_kernel,
        batch=batch, tile_r=tile_r, tiles_per_split=tiles_per_split,
        lanes=lanes, inv_batch=1.0 / batch)

    partials = pl.pallas_call(
        kernel,
        out_shape=jax.ShapeDtypeStruct((num_splits, 1), jnp.float32),
        grid_spec=pltpu.PrefetchScalarGridSpec(
            num_scalar_prefetch=0,
            grid=(num_splits, tiles_per_split),
            in_specs=[
                pl.BlockSpec((tile_r, lanes),
                             lambda c, t: (c * tiles_per_split + t, 0)),
                pl.BlockSpec((tile_r, lanes),
                             lambda c, t: (c * tiles_per_split + t, 0)),
            ],
            out_specs=pl.BlockSpec((1, 1), lambda c, t: (c, 0)),
            scratch_shapes=[pltpu.VMEM((1, lanes), jnp.float32)],
        ),
        compiler_params=pltpu.CompilerParams(
            dimension_semantics=("parallel", "arbitrary"),
            vmem_limit_bytes=32 * 1024 * 1024,
            allow_input_fusion=[True, True],
        ),
    )(c_slab, r_slab)

    # Sum per-split partial means (each already scaled by 1/batch).
    return jnp.sum(partials)


def _reference(chosen, reject):
    return -jnp.mean(jax.nn.log_sigmoid(
        chosen.astype(jnp.float32) - reject.astype(jnp.float32)))


if __name__ == "__main__":
    key = jax.random.PRNGKey(0)
    k1, k2, k3, k4 = jax.random.split(key, 4)

    # 1) Module-typical tiny batch via the fused-jnp fast path.
    batch = 8
    c1 = jax.random.normal(k1, (batch,), dtype=jnp.float32)
    r1 = jax.random.normal(k2, (batch,), dtype=jnp.float32)
    l1 = pairwise_loss(c1, r1)
    jax.block_until_ready(l1)
    assert jnp.allclose(l1, _reference(c1, r1), rtol=1e-5, atol=1e-6), (l1, _reference(c1, r1))

    # 2) Same tiny batch forced through the Pallas kernel (single padded tile,
    #    exercises the tail-mask branch).
    l1k = pairwise_loss(c1, r1, min_pallas_batch=0)
    jax.block_until_ready(l1k)
    assert jnp.allclose(l1k, _reference(c1, r1), rtol=1e-5, atol=1e-6), (l1k, _reference(c1, r1))

    # 3) Ragged bf16 batch (not a multiple of 128): small fused pad + tail mask
    #    + in-kernel f32 upcast.
    b2 = 300
    c2 = jax.random.normal(k3, (b2,), dtype=jnp.float32).astype(jnp.bfloat16)
    r2 = jax.random.normal(k4, (b2,), dtype=jnp.float32).astype(jnp.bfloat16)
    l2 = pairwise_loss(c2, r2, min_pallas_batch=0)
    jax.block_until_ready(l2)
    assert jnp.allclose(l2, _reference(c2, r2), rtol=1e-4, atol=1e-5), (l2, _reference(c2, r2))

    # 4) Multi-tile reduction with boundary mask (tiny tiles force >= 3 tiles).
    b3 = 3000
    c3 = jax.random.normal(k1, (b3,), dtype=jnp.float32)
    r3 = jax.random.normal(k2, (b3,), dtype=jnp.float32)
    l3 = pairwise_loss(c3, r3, tile_rows=8, min_pallas_batch=0)
    jax.block_until_ready(l3)
    assert jnp.allclose(l3, _reference(c3, r3), rtol=1e-4, atol=1e-5), (l3, _reference(c3, r3))

    # 5) Lane-aligned batch (batch % 128 == 0): pure-reshape (no pad) input
    #    path with the default tile size.
    b4 = 128 * 1000
    c4 = jax.random.normal(k3, (b4,), dtype=jnp.float32)
    r4 = jax.random.normal(k4, (b4,), dtype=jnp.float32)
    l4 = pairwise_loss(c4, r4)
    jax.block_until_ready(l4)
    assert jnp.allclose(l4, _reference(c4, r4), rtol=1e-4, atol=1e-5), (l4, _reference(c4, r4))

    print("KERNEL_OK")
</pallas_src>

<mosaic_0001>
module attributes {stable_mosaic.version = 11 : i64} {
  func.func @_pairwise_loss_kernel(%arg0: i32, %arg1: i32, %arg2: memref<8x128xf32, #tpu.memory_space<vmem>>, %arg3: memref<8x128xf32, #tpu.memory_space<vmem>>, %arg4: memref<1x1xf32, #tpu.memory_space<vmem>>, %arg5: memref<1x128xf32, #tpu.memory_space<vmem>>) attributes {dimension_semantics = [#tpu.dimension_semantics<parallel>, #tpu.dimension_semantics<arbitrary>], iteration_bounds = array<i64: 1, 1>, scalar_prefetch = 0 : i64, scratch_operands = 1 : i64, tpu.core_type = #tpu.core_type<tc>, window_params = [{transform_indices = @transform_0, window_bounds = array<i64: 8, 128>}, {transform_indices = @transform_1, window_bounds = array<i64: 8, 128>}, {transform_indices = @transform_2, window_bounds = array<i64: 1, 1>}]} {
    %c1_i32 = arith.constant 1 : i32
    %0 = arith.muli %arg0, %c1_i32 : i32
    %1 = arith.addi %0, %arg1 : i32
    %c0_i32 = arith.constant 0 : i32
    %2 = arith.cmpi eq, %arg1, %c0_i32 : i32
    %3 = arith.extui %2 : i1 to i32
    %c0_i32_0 = arith.constant 0 : i32
    %4 = arith.cmpi ne, %3, %c0_i32_0 : i32
    scf.if %4 {
      %cst_11 = arith.constant 0.000000e+00 : f32
      %29 = vector.broadcast %cst_11 : f32 to vector<1x128xf32>
      %c0_12 = arith.constant 0 : index
      %c0_13 = arith.constant 0 : index
      %30 = vector.load %arg5[%c0_12, %c0_13] : memref<1x128xf32, #tpu.memory_space<vmem>>, vector<1x128xf32>
      tpu.vector_store %arg5[%c0_12, %c0_13], %29 {strides = array<i32>} : memref<1x128xf32, #tpu.memory_space<vmem>>, vector<1x128xf32>,
    } else {
    }
    %c0 = arith.constant 0 : index
    %c0_1 = arith.constant 0 : index
    %5 = vector.load %arg2[%c0, %c0_1] : memref<8x128xf32, #tpu.memory_space<vmem>>, vector<8x128xf32>
    %c0_2 = arith.constant 0 : index
    %c0_3 = arith.constant 0 : index
    %6 = vector.load %arg3[%c0_2, %c0_3] : memref<8x128xf32, #tpu.memory_space<vmem>>, vector<8x128xf32>
    %7 = arith.subf %5, %6 : vector<8x128xf32>
    %cst = arith.constant 0.000000e+00 : f32
    %8 = vector.broadcast %cst : f32 to vector<8x128xf32>
    %9 = arith.subf %8, %7 : vector<8x128xf32>
    %cst_4 = arith.constant 0.000000e+00 : f32
    %10 = vector.broadcast %cst_4 : f32 to vector<8x128xf32>
    %11 = arith.maximumf %9, %10 : vector<8x128xf32>
    %12 = math.absf %7 : vector<8x128xf32>
    %cst_5 = arith.constant 0.000000e+00 : f32
    %13 = vector.broadcast %cst_5 : f32 to vector<8x128xf32>
    %14 = arith.subf %13, %12 : vector<8x128xf32>
    %15 = math.exp %14 : vector<8x128xf32>
    %16 = math.log1p %15 : vector<8x128xf32>
    %17 = arith.addf %11, %16 : vector<8x128xf32>
    %c1_i32_6 = arith.constant 1 : i32
    %18 = arith.addi %1, %c1_i32_6 : i32
    %c1024_i32 = arith.constant 1024 : i32
    %19 = arith.muli %18, %c1024_i32 : i32
    %c8_i32 = arith.constant 8 : i32
    %20 = arith.cmpi sgt, %19, %c8_i32 : i32
    %true = arith.constant true
    %21 = arith.xori %20, %true : i1
    %22 = arith.extui %21 : i1 to i32
    %c0_i32_7 = arith.constant 0 : i32
    %23 = arith.cmpi ne, %22, %c0_i32_7 : i32
    scf.if %23 {
      %c0_11 = arith.constant 0 : index
      %c0_12 = arith.constant 0 : index
      %29 = vector.load %arg5[%c0_11, %c0_12] : memref<1x128xf32, #tpu.memory_space<vmem>>, vector<1x128xf32>
      %cst_13 = arith.constant dense<0.000000e+00> : vector<128xf32>
      %30 = vector.multi_reduction <add>, %17, %cst_13 [0] : vector<8x128xf32> to vector<128xf32>
      %31 = vector.shape_cast %30 : vector<128xf32> to vector<1x128xf32>
      %32 = arith.addf %29, %31 : vector<1x128xf32>
      %c0_14 = arith.constant 0 : index
      %c0_15 = arith.constant 0 : index
      %33 = vector.load %arg5[%c0_14, %c0_15] : memref<1x128xf32, #tpu.memory_space<vmem>>, vector<1x128xf32>
      tpu.vector_store %arg5[%c0_14, %c0_15], %32 {strides = array<i32>} : memref<1x128xf32, #tpu.memory_space<vmem>>, vector<1x128xf32>,
    } else {
    }
    %24 = arith.extui %20 : i1 to i32
    %c0_i32_8 = arith.constant 0 : i32
    %25 = arith.cmpi ne, %24, %c0_i32_8 : i32
    scf.if %25 {
      %29 = tpu.iota {dimensions = array<i32: 0>} : vector<8x128xi32>
      %30 = tpu.iota {dimensions = array<i32: 1>} : vector<8x128xi32>
      %c8_i32_11 = arith.constant 8 : i32
      %31 = arith.muli %1, %c8_i32_11 : i32
      %32 = vector.broadcast %31 : i32 to vector<8x128xi32>
      %33 = arith.addi %32, %29 : vector<8x128xi32>
      %c128_i32 = arith.constant 128 : i32
      %34 = vector.broadcast %c128_i32 : i32 to vector<8x128xi32>
      %35 = arith.muli %33, %34 : vector<8x128xi32>
      %36 = arith.addi %35, %30 : vector<8x128xi32>
      %c8_i32_12 = arith.constant 8 : i32
      %37 = vector.broadcast %c8_i32_12 : i32 to vector<8x128xi32>
      %38 = arith.cmpi slt, %36, %37 : vector<8x128xi32>
      %cst_13 = arith.constant 0.000000e+00 : f32
      %39 = vector.broadcast %cst_13 : f32 to vector<8x128xf32>
      %40 = arith.select %38, %17, %39 : vector<8x128xi1>, vector<8x128xf32>
      %c0_14 = arith.constant 0 : index
      %c0_15 = arith.constant 0 : index
      %41 = vector.load %arg5[%c0_14, %c0_15] : memref<1x128xf32, #tpu.memory_space<vmem>>, vector<1x128xf32>
      %cst_16 = arith.constant dense<0.000000e+00> : vector<128xf32>
      %42 = vector.multi_reduction <add>, %40, %cst_16 [0] : vector<8x128xf32> to vector<128xf32>
      %43 = vector.shape_cast %42 : vector<128xf32> to vector<1x128xf32>
      %44 = arith.addf %41, %43 : vector<1x128xf32>
      %c0_17 = arith.constant 0 : index
      %c0_18 = arith.constant 0 : index
      %45 = vector.load %arg5[%c0_17, %c0_18] : memref<1x128xf32, #tpu.memory_space<vmem>>, vector<1x128xf32>
      tpu.vector_store %arg5[%c0_17, %c0_18], %44 {strides = array<i32>} : memref<1x128xf32, #tpu.memory_space<vmem>>, vector<1x128xf32>,
    } else {
    }
    %c0_i32_9 = arith.constant 0 : i32
    %26 = arith.cmpi eq, %arg1, %c0_i32_9 : i32
    %27 = arith.extui %26 : i1 to i32
    %c0_i32_10 = arith.constant 0 : i32
    %28 = arith.cmpi ne, %27, %c0_i32_10 : i32
    scf.if %28 {
      %c0_11 = arith.constant 0 : index
      %c0_12 = arith.constant 0 : index
      %29 = vector.load %arg5[%c0_11, %c0_12] : memref<1x128xf32, #tpu.memory_space<vmem>>, vector<1x128xf32>
      %30 = vector.shape_cast %29 : vector<1x128xf32> to vector<1x1x128xf32>
      %cst_13 = arith.constant dense<0.000000e+00> : vector<1xf32>
      %31 = vector.multi_reduction <add>, %30, %cst_13 [1, 2] : vector<1x1x128xf32> to vector<1xf32>
      %32 = vector.shape_cast %31 : vector<1xf32> to vector<1x1x1xf32>
      %33 = vector.extract %32[0, 0, 0] : f32 from vector<1x1x1xf32>
      %34 = vector.broadcast %33 : f32 to vector<1x1xf32>
      %cst_14 = arith.constant 1.250000e-01 : f32
      %35 = vector.broadcast %cst_14 : f32 to vector<1x1xf32>
      %36 = arith.mulf %34, %35 : vector<1x1xf32>
      %c0_15 = arith.constant 0 : index
      %c0_16 = arith.constant 0 : index
      %37 = vector.load %arg4[%c0_15, %c0_16] : memref<1x1xf32, #tpu.memory_space<vmem>>, vector<1x1xf32>
      tpu.vector_store %arg4[%c0_15, %c0_16], %36 {strides = array<i32>} : memref<1x1xf32, #tpu.memory_space<vmem>>, vector<1x1xf32>,
    } else {
    }
    return
  }
  func.func @transform_0(%arg0: i32, %arg1: i32) -> (i32, i32) {
    %c1_i32 = arith.constant 1 : i32
    %0 = arith.muli %arg0, %c1_i32 : i32
    %1 = arith.addi %0, %arg1 : i32
    %c0_i32 = arith.constant 0 : i32
    %c0_i32_0 = arith.constant 0 : i32
    return %1, %c0_i32 : i32, i32
  }
  func.func @transform_1(%arg0: i32, %arg1: i32) -> (i32, i32) {
    %c1_i32 = arith.constant 1 : i32
    %0 = arith.muli %arg0, %c1_i32 : i32
    %1 = arith.addi %0, %arg1 : i32
    %c0_i32 = arith.constant 0 : i32
    %c0_i32_0 = arith.constant 0 : i32
    return %1, %c0_i32 : i32, i32
  }
  func.func @transform_2(%arg0: i32, %arg1: i32) -> (i32, i32) {
    %c0_i32 = arith.constant 0 : i32
    %c0_i32_0 = arith.constant 0 : i32
    return %arg0, %c0_i32 : i32, i32
  }
}

</mosaic_0001>

<bundles_post_ra>
// kernel: tpu_custom_call.1
= control target key start
LH: loop header
LB: loop body
LE: loop exit
PB: predicated region body
PF: predicated region fallthrough
CT: control target
= control target key end

     0   :  { %7 = vsyncpa [#allocation4], 0  ;;  %s280_s0 = inlined_call_operand.hbm [shape: f32[8,128], index: 0, kind: input, shape index: {}]   ;;  %s281_s1 = inlined_call_operand.hbm [shape: f32[8,128], index: 1, kind: input, shape index: {}]   ;;  %s282_s2 = inlined_call_operand.hbm [shape: f32[1,1], index: 2, kind: output, shape index: {}]  }
   0x1   :  { %8 = vsyncpa [#allocation7], 0 }
   0x2   :  { %9 = vsyncpa [#allocation5], 0  ;;  %s225_s9 = smov [#allocation3]   ;;  %s226_s11 = smov [#allocation6]  }
   0x3   :  { %s19_s10 = sshll.u32 %s225_s9, 4  ;;  %s32_s12 = sshll.u32 %s226_s11, 4  ;;  %s20_s10 = int_to_ptr.vmem [resolvable:$true] %s19_s10  ;;  %s33_s12 = int_to_ptr.vmem [resolvable:$true] %s32_s12 }
   0x4   :  { %s153_s15 = scalar_lea.hbm %s280_s0, 128 }
   0x5   :  { %p154_p0 = scmp.ne.s32.totalorder %s280_s0, %s153_s15  ;;  %p157_p1 = scmp.lt.u32.totalorder %s153_s15, %s280_s0 }
   0x7   :  { %p159_p2 = pnand %p157_p1, %p154_p0 }
   0x9   :  { %162 = shalt.err (!%p159_p2)
}
   0xa   :  { %s163_s20 = scalar_lea.vmem %s20_s10, 128  ;;  %p168_p4 = scmp.lt.s32.totalorder %s20_s10, %s20_s10 }
   0xb   :  { %p164_p3 = scmp.ne.s32.totalorder %s20_s10, %s163_s20  ;;  %p169_p5 = scmp.lt.s32.totalorder %s163_s20, %s163_s20 }
   0xd   :  { %p170_p6 = por %p169_p5, %p168_p4 }
   0xf   :  { %p171_p7 = pnand %p170_p6, %p164_p3 }
  0x11   :  { %174 = shalt.err (!%p171_p7)
}
  0x12   :  { %22 = dma.hbm_to_vmem [thread:$0]  %s280_s0, 128, %s20_s10, [#allocation4]  }
  0x13   :  { %s175_s25 = scalar_lea.hbm %s281_s1, 128 }
  0x14   :  { %p176_p8 = scmp.ne.s32.totalorder %s281_s1, %s175_s25  ;;  %p179_p9 = scmp.lt.u32.totalorder %s175_s25, %s281_s1 }
  0x16   :  { %p181_p10 = pnand %p179_p9, %p176_p8 }
  0x18   :  { %184 = shalt.err (!%p181_p10)
}
  0x19   :  { %s185_s30 = scalar_lea.vmem %s33_s12, 128  ;;  %p190_p12 = scmp.lt.s32.totalorder %s33_s12, %s33_s12 }
  0x1a   :  { %p186_p11 = scmp.ne.s32.totalorder %s33_s12, %s185_s30  ;;  %p191_p13 = scmp.lt.s32.totalorder %s185_s30, %s185_s30 }
  0x1c   :  { %p192_p0 = por %p191_p13, %p190_p12 }
  0x1e   :  { %p193_p1 = pnand %p192_p0, %p186_p11 }
  0x20   :  { %196 = shalt.err (!%p193_p1)
}
  0x21   :  { %35 = dma.hbm_to_vmem [thread:$0]  %s281_s1, 128, %s33_s12, [#allocation7]  }
  0x22   :  { %219 = dma.done.wait [#allocation4], 128  }
  0x23   :  { %220 = vsyncadd [#allocation4], 4294967168 }
  0x24   :  { %221 = dma.done.wait [#allocation7], 128  }
  0x25   :  { %222 = vsyncadd [#allocation7], 4294967168  ;;  %v227_v0 = vmov 0.0   ;;  %v50_v1 = vld [vmem:[#allocation3] sm:$0xff]  ;;  %v51_v2 = vld [vmem:[#allocation6] sm:$0xff]  ;;  %v88_v8 = vlaneseq  ;;  %vm112_vm2 = vcmask 1040384  }
  0x26   :  { %49 = vst [vmem:[#allocation2] sm:$0x1] %v227_v0  ;;  %v52_v3 = vsub.f32 %v50_v1, %v51_v2  ;;  %s228_s1 = smov [#allocation8]   ;;  %vm125_vm3 = vcmask 0  }
  0x27   :  { %v89_v11 = vshrl.u32 %v88_v8, 7  ;;  %v91_v13 = vand.u32 127, %v88_v8  ;;  %s133_s4 = sshll.u32 %s228_s1, 4  ;;  %s134_s4 = int_to_ptr.vmem [resolvable:$true] %s133_s4 }
  0x28   :  { %v55_v4 = vand.u32 2147483647, %v52_v3  ;;  %v53_v15 = vsub.f32 0.0, %v52_v3  ;;  %s197_s6 = scalar_lea.vmem %s134_s4, 16  ;;  %s201_s7 = scalar_lea.vmem %s134_s4, 32 }
  0x29   :  { %v95_v14 = vmul.u32 128, %v89_v11  ;;  %p198_p2 = scmp.ne.s32.totalorder %s134_s4, %s197_s6  ;;  %p202_p3 = scmp.lt.s32.totalorder %s134_s4, %s134_s4 }
  0x2a   :  { %v56_v5 = vsub.f32 0.0, %v55_v4  ;;  %v54_v20 = vmax.f32 %v53_v15, 0.0  ;;  %p203_p4 = scmp.lt.s32.totalorder %s201_s7, %s197_s6 }
  0x2b   :  { %v96_v18 = vadd.s32 %v95_v14, %v91_v13 }
  0x2c   :  { %v57_v6 = vmul.f32 1.442695, %v56_v5  ;;  %p204_p5 = por %p203_p4, %p202_p3 }
  0x2d   :  { %vm97_vm1 = vcmp.lt.s32.totalorder %v96_v18, 8  ;;  %v99_v30 = vld [vmem:[#allocation2] sm:$0x1] }
  0x2e   :  { %149 = vpow2.f32 %v57_v6  ;;  %p205_p6 = pnand %p204_p5, %p198_p2 }
  0x38   :  { %v150_v7 = vpop.eup %149 }
  0x39   :  { %v59_v9 = vadd.f32 1.0, %v150_v7  ;;  %v62_v10 = vmul.f32 -0.5, %v150_v7  ;;  %v65_v16 = vand.u32 2147483647, %v150_v7 }
  0x3b   :  { %151 = vlog2.f32 %v59_v9  ;;  %v63_v12 = vadd.f32 1.0, %v62_v10  ;;  %vm66_vm0 = vcmp.lt.f32.partialorder %v65_v16, 0.0004427343 }
  0x3d   :  { %v64_v17 = vmul.f32 %v150_v7, %v63_v12 }
  0x45   :  { %v152_v19 = vpop.eup %151 }
  0x46   :  { %v61_v21 = vmul.f32 0.6931472, %v152_v19 }
  0x48   :  { %v67_v22 = vsel %vm66_vm0, %v64_v17, %v61_v21 }
  0x49   :  { %v68_v23 = vadd.f32 %v67_v22, %v54_v20 }
  0x4b   :  { %v98_v24 = vsel %vm97_vm1, %v68_v23, 0.0 }
  0x4c   :  { %v100_v25 = vrot.slane %v98_v24, 4 }
  0x4e   :  { %v101_v26 = vadd.f32 %v100_v25, %v98_v24 }
  0x50   :  { %v102_v27 = vrot.slane %v101_v26, 2 }
  0x52   :  { %v103_v28 = vadd.f32 %v102_v27, %v101_v26 }
  0x54   :  { %v104_v29 = vrot.slane %v103_v28, 1 }
  0x56   :  { %v105_v31 = vadd.f32 %v104_v29, %v103_v28 }
  0x58   :  { %v106_v32 = vadd.f32 %v105_v31, %v99_v30 }
  0x5a   :  { %107 = vst [vmem:[#allocation2] sm:$0x1] %v106_v32 }
  0x61   :  { %v111_v33 = vld [vmem:[#allocation2] sm:$0x1] }
  0x62   :  { %v113_v34 = vsel %vm112_vm2, %v111_v33, 0.0 }
  0x63   :  { %114 = vadd.xlane.f32.xlu0 %v113_v34 }
  0xf0   :  { %v115_v35 = vpop.xlane.xlu0 %114 }
  0xf1   :  { %v116_v36 = vrot.slane %v115_v35, 4 }
  0xf3   :  { %v117_v37 = vadd.f32 %v116_v36, %v115_v35 }
  0xf5   :  { %v118_v38 = vrot.slane %v117_v37, 2 }
  0xf7   :  { %v119_v39 = vadd.f32 %v118_v38, %v117_v37 }
  0xf9   :  { %v120_v40 = vrot.slane %v119_v39, 1 }
  0xfb   :  { %v121_v41 = vadd.f32 %v120_v40, %v119_v39 }
  0xfd   :  { %143 = vpush %v121_v41 }
 0x12e   :  { %s144_s5 = spop %143 }
 0x12f   :  { %v123_v42 = vstv %s144_s5 }
 0x130   :  { %v124_v43 = vmul.f32 0.125, %v123_v42 }
 0x132   :  { %126 = vst.msk [vmem:[#allocation8] sm:$0x1] %vm125_vm3, %v124_v43 }
 0x133   :  { %208 = shalt.err (!%p205_p6)
}
 0x134   :  { %s209_s10 = scalar_lea.hbm %s282_s2, 16 }
 0x135   :  { %p210_p7 = scmp.ne.s32.totalorder %s282_s2, %s209_s10  ;;  %p213_p8 = scmp.lt.u32.totalorder %s209_s10, %s282_s2 }
 0x137   :  { %p215_p9 = pnand %p213_p8, %p210_p7 }
 0x139   :  { %218 = shalt.err (!%p215_p9)
}
 0x13a   :  { %136 = dma.vmem_to_hbm [thread:$0]  %s134_s4, 16, %s282_s2, [#allocation5]  }
 0x13b   :  { %223 = dma.done.wait [#allocation5], 16  }
 0x13c   :  { %224 = vsyncadd [#allocation5], 4294967280 }
 0x13d   :  { %140 = vsyncpa [#allocation4], 1 }
 0x13e   :  { %141 = vsyncpa [#allocation7], 1 }
 0x13f   :  { %142 = vsyncpa [#allocation5], 1 }

</bundles_post_ra>
